<compile_context>
chip_gen: v7x
topology: tpu7x:2x2x1
jax: 0.10.0
libtpu: 0.0.40
codegen_flags: <defaults>
</compile_context>

<pallas_src>
import functools

import jax
import jax.numpy as jnp
from jax import lax
from jax.experimental import pallas as pl
from jax.experimental.pallas import tpu as pltpu

_NEG_INF = float("-inf")


def _combined_readout_kernel(g_lo_ref, g_hi_ref,                 # SMEM (prefetch)
                             batch_row_ref, batch_col_ref, x_ref,  # VMEM inputs
                             sum_ref, max_ref, cnt_ref,            # resident outputs
                             loc_max_ref,                          # VMEM scratch
                             *, num_nodes, mask_tail):
    i = pl.program_id(0)
    g_pad = sum_ref.shape[0]
    tile_n = x_ref.shape[0]

    # Init the resident accumulators on the first node tile.
    @pl.when(i == 0)
    def _init():
        sum_ref[...] = jnp.zeros_like(sum_ref)
        max_ref[...] = jnp.full_like(max_ref, _NEG_INF)
        cnt_ref[...] = jnp.zeros_like(cnt_ref)

    xv = x_ref[...]                                    # (tile_n, C), native dtype
    if mask_tail:
        # Zero OOB rows of the (possibly partial) last tile so stale-VMEM
        # NaN/Inf cannot leak through 0*NaN in the matmul.  Sentinel-padded
        # batch ids already exclude these rows from count/max/one-hot.
        sub_ids = lax.broadcasted_iota(jnp.int32, (tile_n, 1), 0)
        valid = (i * tile_n + sub_ids) < num_nodes
        xv = jnp.where(valid, xv, jnp.zeros_like(xv))

    # ---- sum + count: one-hot matmul on the MXU (lane-major batch ids) ----
    b_row = batch_row_ref[...]                         # (1, tile_n) int32 (-1 pad)
    gids = lax.broadcasted_iota(jnp.int32, (g_pad, tile_n), 0)
    match = gids == b_row                              # (g_pad, tile_n) bool
    one_hot = match.astype(xv.dtype)
    sum_ref[...] += jnp.dot(one_hot, xv, preferred_element_type=jnp.float32)
    cnt_ref[...] += match.astype(jnp.float32).sum(axis=1, keepdims=True)

    # ---- max: visit only the graphs present in this tile -------------------
    b_col = batch_col_ref[...]                         # (tile_n, 1) int32 (-1 pad)
    x_f32 = xv.astype(jnp.float32)
    g_lo = g_lo_ref[i]
    g_hi = g_hi_ref[i]

    loc_max_ref[...] = jnp.full_like(loc_max_ref, _NEG_INF)   # per-tile local acc

    def max_body(idx, carry):
        g = g_lo + idx
        mask_g = b_col == g                            # (tile_n, 1)
        mg = jnp.where(mask_g, x_f32, _NEG_INF)        # (tile_n, C)
        loc_max_ref[pl.ds(g, 1), :] = jnp.max(mg, axis=0, keepdims=True)
        return carry

    lax.fori_loop(0, g_hi - g_lo + 1, max_body, 0)
    # Single merge per tile instead of a per-graph RMW on the resident output.
    max_ref[...] = jnp.maximum(max_ref[...], loc_max_ref[...])


def combined_read_out(x: jax.Array, batch: jax.Array, num_graphs: int,
                      *, tile_n: int = 1024, sorted_batch: bool = True) -> jax.Array:
    """CombinedReadOut(("sum","mean","max"))(x, batch) -> [num_graphs, 3*C]."""
    n, c = x.shape
    batch = batch.astype(jnp.int32)
    itemsize = jnp.dtype(x.dtype).itemsize

    # Keep the double-buffered x tile modest (VMEM budget also holds on v7x).
    while tile_n > 256 and 2 * tile_n * c * itemsize > 8 * (1 << 20):
        tile_n //= 2
    assert tile_n % 128 == 0, "tile_n must be a multiple of 128"

    tile_n_eff = tile_n if n > tile_n else n
    num_tiles = (n + tile_n_eff - 1) // tile_n_eff
    n_pad = num_tiles * tile_n_eff
    mask_tail = n_pad != n
    g_pad = ((num_graphs + 7) // 8) * 8                # sublane-align accumulators

    # Sentinel-pad the (tiny) batch vector; x itself is never padded in HBM.
    batch_p = jnp.pad(batch, (0, n_pad - n), constant_values=-1) if mask_tail else batch
    batch_row = batch_p.reshape(1, n_pad)              # lane-major ids
    batch_col = batch_p.reshape(n_pad, 1)              # sublane-major ids

    # Per-tile graph ranges for the max loop (scalar-prefetched to SMEM).
    if sorted_batch:
        starts = jnp.arange(num_tiles, dtype=jnp.int32) * tile_n_eff
        ends = jnp.minimum(starts + tile_n_eff, n) - 1
        g_lo = batch[starts]
        g_hi = batch[ends]
    else:
        g_lo = jnp.zeros((num_tiles,), jnp.int32)
        g_hi = jnp.full((num_tiles,), num_graphs - 1, jnp.int32)

    kernel = functools.partial(_combined_readout_kernel,
                               num_nodes=n, mask_tail=mask_tail)

    # Rough VMEM need: double-buffered x + lane-padded batch blocks + resident
    # accumulators; clamp the scoped limit to 48 MiB (< v7x 64 MiB physical).
    vmem_need = (2 * tile_n_eff * c * itemsize
                 + 2 * 2 * tile_n_eff * 128 * 4
                 + 4 * g_pad * max(c, 128) * 4)
    vmem_limit = int(min(48 * (1 << 20), max(32 * (1 << 20), 2 * vmem_need)))

    sums, maxs, cnts = pl.pallas_call(
        kernel,
        out_shape=(
            jax.ShapeDtypeStruct((g_pad, c), jnp.float32),
            jax.ShapeDtypeStruct((g_pad, c), jnp.float32),
            jax.ShapeDtypeStruct((g_pad, 1), jnp.float32),
        ),
        grid_spec=pltpu.PrefetchScalarGridSpec(
            num_scalar_prefetch=2,
            grid=(num_tiles,),
            in_specs=[
                pl.BlockSpec((1, tile_n_eff), lambda i, glo, ghi: (0, i)),   # batch (row)
                pl.BlockSpec((tile_n_eff, 1), lambda i, glo, ghi: (i, 0)),   # batch (col)
                pl.BlockSpec((tile_n_eff, c), lambda i, glo, ghi: (i, 0)),   # node features
            ],
            out_specs=[
                pl.BlockSpec((g_pad, c), lambda i, glo, ghi: (0, 0)),        # sum (resident)
                pl.BlockSpec((g_pad, c), lambda i, glo, ghi: (0, 0)),        # max (resident)
                pl.BlockSpec((g_pad, 1), lambda i, glo, ghi: (0, 0)),        # count (resident)
            ],
            scratch_shapes=[pltpu.VMEM((g_pad, c), jnp.float32)],            # per-tile local max
        ),
        compiler_params=pltpu.CompilerParams(
            dimension_semantics=("arbitrary",),       # node axis is a reduction
            vmem_limit_bytes=vmem_limit,
        ),
    )(g_lo, g_hi, batch_row, batch_col, x)

    sums = sums[:num_graphs]
    maxs = maxs[:num_graphs]
    cnts = cnts[:num_graphs]
    inv = jnp.where(cnts > 0, 1.0 / cnts, 0.0)
    means = sums * inv
    maxs = jnp.where(cnts > 0, maxs, 0.0)             # empty graphs -> 0 (documented)
    return jnp.concatenate([sums, means, maxs], axis=1).astype(x.dtype)


if __name__ == "__main__":
    key = jax.random.PRNGKey(0)

    num_graphs = 5
    in_channels = 32
    graph_sizes = (48, 40, 56, 36, 20)       # sorted PyG-style batch, no empty graphs
    num_nodes = sum(graph_sizes)             # 200

    x = jax.random.normal(key, (num_nodes, in_channels), dtype=jnp.float32)
    batch = jnp.concatenate(
        [jnp.full((s,), g, dtype=jnp.int32) for g, s in enumerate(graph_sizes)])

    # Reference: plain-JAX segment ops, concatenated like CombinedReadOut.forward.
    xf = x.astype(jnp.float32)
    seg_sum = jax.ops.segment_sum(xf, batch, num_segments=num_graphs)
    seg_cnt = jax.ops.segment_sum(jnp.ones((num_nodes, 1), jnp.float32), batch,
                                  num_segments=num_graphs)
    ref = jnp.concatenate([seg_sum, seg_sum / seg_cnt,
                           jax.ops.segment_max(xf, batch, num_segments=num_graphs)], axis=1)

    # Multi-tile path with a partial last tile (exercises tail masking and
    # per-tile graph ranges).
    out_tiled = combined_read_out(x, batch, num_graphs, tile_n=128)
    jax.block_until_ready(out_tiled)
    assert out_tiled.shape == (num_graphs, 3 * in_channels)
    assert jnp.allclose(out_tiled, ref, atol=1e-5, rtol=1e-5)

    # Single-tile path (default tile covers all nodes, no masking compiled in).
    out_single = combined_read_out(x, batch, num_graphs)
    jax.block_until_ready(out_single)
    assert jnp.allclose(out_single, ref, atol=1e-5, rtol=1e-5)

    print("KERNEL_OK")
</pallas_src>

<mosaic_0001>
module attributes {stable_mosaic.version = 11 : i64} {
  func.func @_combined_readout_kernel(%arg0: i32, %arg1: memref<2xi32, #tpu.memory_space<smem>>, %arg2: memref<2xi32, #tpu.memory_space<smem>>, %arg3: memref<1x128xi32, #tpu.memory_space<vmem>>, %arg4: memref<128x1xi32, #tpu.memory_space<vmem>>, %arg5: memref<128x32xf32, #tpu.memory_space<vmem>>, %arg6: memref<8x32xf32, #tpu.memory_space<vmem>>, %arg7: memref<8x32xf32, #tpu.memory_space<vmem>>, %arg8: memref<8x1xf32, #tpu.memory_space<vmem>>, %arg9: memref<8x32xf32, #tpu.memory_space<vmem>>) attributes {dimension_semantics = [#tpu.dimension_semantics<arbitrary>], iteration_bounds = array<i64: 2>, scalar_prefetch = 2 : i64, scratch_operands = 1 : i64, tpu.core_type = #tpu.core_type<tc>, window_params = [{transform_indices = @transform_0, window_bounds = array<i64: 1, 128>}, {transform_indices = @transform_1, window_bounds = array<i64: 128, 1>}, {transform_indices = @transform_2, window_bounds = array<i64: 128, 32>}, {pipeline_mode = #tpu.pipeline_mode<synchronous>, transform_indices = @transform_3, window_bounds = array<i64: 8, 32>}, {pipeline_mode = #tpu.pipeline_mode<synchronous>, transform_indices = @transform_4, window_bounds = array<i64: 8, 32>}, {pipeline_mode = #tpu.pipeline_mode<synchronous>, transform_indices = @transform_5, window_bounds = array<i64: 8, 1>}]} {
    %c0_i32 = arith.constant 0 : i32
    %0 = arith.cmpi eq, %arg0, %c0_i32 : i32
    %1 = arith.extui %0 : i1 to i32
    %c0_i32_0 = arith.constant 0 : i32
    %2 = arith.cmpi ne, %1, %c0_i32_0 : i32
    scf.if %2 {
      %cst_28 = arith.constant 0.000000e+00 : f32
      %46 = vector.broadcast %cst_28 : f32 to vector<8x32xf32>
      %c0_29 = arith.constant 0 : index
      %c0_30 = arith.constant 0 : index
      %47 = vector.load %arg6[%c0_29, %c0_30] : memref<8x32xf32, #tpu.memory_space<vmem>>, vector<8x32xf32>
      tpu.vector_store %arg6[%c0_29, %c0_30], %46 {strides = array<i32>} : memref<8x32xf32, #tpu.memory_space<vmem>>, vector<8x32xf32>,
      %cst_31 = arith.constant 0xFF800000 : f32
      %48 = vector.broadcast %cst_31 : f32 to vector<8x32xf32>
      %c0_32 = arith.constant 0 : index
      %c0_33 = arith.constant 0 : index
      %49 = vector.load %arg7[%c0_32, %c0_33] : memref<8x32xf32, #tpu.memory_space<vmem>>, vector<8x32xf32>
      tpu.vector_store %arg7[%c0_32, %c0_33], %48 {strides = array<i32>} : memref<8x32xf32, #tpu.memory_space<vmem>>, vector<8x32xf32>,
      %cst_34 = arith.constant 0.000000e+00 : f32
      %50 = vector.broadcast %cst_34 : f32 to vector<8x1xf32>
      %c0_35 = arith.constant 0 : index
      %c0_36 = arith.constant 0 : index
      %51 = vector.load %arg8[%c0_35, %c0_36] : memref<8x1xf32, #tpu.memory_space<vmem>>, vector<8x1xf32>
      tpu.vector_store %arg8[%c0_35, %c0_36], %50 {strides = array<i32>} : memref<8x1xf32, #tpu.memory_space<vmem>>, vector<8x1xf32>,
    } else {
    }
    %c0 = arith.constant 0 : index
    %c0_1 = arith.constant 0 : index
    %3 = vector.load %arg5[%c0, %c0_1] : memref<128x32xf32, #tpu.memory_space<vmem>>, vector<128x32xf32>
    %4 = tpu.iota {dimensions = array<i32: 0>} : vector<128x1xi32>
    %c128_i32 = arith.constant 128 : i32
    %5 = arith.muli %arg0, %c128_i32 : i32
    %6 = vector.broadcast %5 : i32 to vector<128x1xi32>
    %7 = arith.addi %6, %4 : vector<128x1xi32>
    %c200_i32 = arith.constant 200 : i32
    %8 = vector.broadcast %c200_i32 : i32 to vector<128x1xi32>
    %9 = arith.cmpi slt, %7, %8 : vector<128x1xi32>
    %cst = arith.constant 0.000000e+00 : f32
    %10 = vector.broadcast %cst : f32 to vector<128x32xf32>
    %11 = vector.shape_cast %9 : vector<128x1xi1> to vector<128x1xi1>
    %12 = vector.broadcast %11 : vector<128x1xi1> to vector<128x32xi1>
    %13 = arith.select %12, %3, %10 : vector<128x32xi1>, vector<128x32xf32>
    %c0_2 = arith.constant 0 : index
    %c0_3 = arith.constant 0 : index
    %14 = vector.load %arg3[%c0_2, %c0_3] : memref<1x128xi32, #tpu.memory_space<vmem>>, vector<1x128xi32>
    %15 = tpu.iota {dimensions = array<i32: 0>} : vector<8x128xi32>
    %16 = vector.broadcast %14 : vector<1x128xi32> to vector<8x128xi32>
    %17 = arith.cmpi eq, %15, %16 : vector<8x128xi32>
    %18 = arith.extui %17 : vector<8x128xi1> to vector<8x128xi32>
    %19 = arith.sitofp %18 : vector<8x128xi32> to vector<8x128xf32>
    %c0_4 = arith.constant 0 : index
    %c0_5 = arith.constant 0 : index
    %20 = vector.load %arg6[%c0_4, %c0_5] : memref<8x32xf32, #tpu.memory_space<vmem>>, vector<8x32xf32>
    %cst_6 = arith.constant dense<0.000000e+00> : vector<8x32xf32>
    %21 = tpu.matmul %19, %13, %cst_6 {dimension_numbers = #tpu.dot_dimension_numbers<[1], [0], [0], [1], [0, 0, 1, 1], [], []>} : vector<8x128xf32>, vector<128x32xf32>, vector<8x32xf32> -> vector<8x32xf32>
    %22 = arith.addf %20, %21 : vector<8x32xf32>
    %c0_7 = arith.constant 0 : index
    %c0_8 = arith.constant 0 : index
    %23 = vector.load %arg6[%c0_7, %c0_8] : memref<8x32xf32, #tpu.memory_space<vmem>>, vector<8x32xf32>
    tpu.vector_store %arg6[%c0_7, %c0_8], %22 {strides = array<i32>} : memref<8x32xf32, #tpu.memory_space<vmem>>, vector<8x32xf32>,
    %c0_9 = arith.constant 0 : index
    %c0_10 = arith.constant 0 : index
    %24 = vector.load %arg8[%c0_9, %c0_10] : memref<8x1xf32, #tpu.memory_space<vmem>>, vector<8x1xf32>
    %25 = arith.extui %17 : vector<8x128xi1> to vector<8x128xi32>
    %26 = arith.sitofp %25 : vector<8x128xi32> to vector<8x128xf32>
    %cst_11 = arith.constant dense<0.000000e+00> : vector<8xf32>
    %27 = vector.multi_reduction <add>, %26, %cst_11 [1] : vector<8x128xf32> to vector<8xf32>
    %28 = vector.shape_cast %27 : vector<8xf32> to vector<8x1xf32>
    %29 = arith.addf %24, %28 : vector<8x1xf32>
    %c0_12 = arith.constant 0 : index
    %c0_13 = arith.constant 0 : index
    %30 = vector.load %arg8[%c0_12, %c0_13] : memref<8x1xf32, #tpu.memory_space<vmem>>, vector<8x1xf32>
    tpu.vector_store %arg8[%c0_12, %c0_13], %29 {strides = array<i32>} : memref<8x1xf32, #tpu.memory_space<vmem>>, vector<8x1xf32>,
    %c0_14 = arith.constant 0 : index
    %c0_15 = arith.constant 0 : index
    %31 = vector.load %arg4[%c0_14, %c0_15] : memref<128x1xi32, #tpu.memory_space<vmem>>, vector<128x1xi32>
    %32 = arith.index_cast %arg0 : i32 to index
    %33 = memref.load %arg1[%32] : memref<2xi32, #tpu.memory_space<smem>>
    %34 = arith.index_cast %arg0 : i32 to index
    %35 = memref.load %arg2[%34] : memref<2xi32, #tpu.memory_space<smem>>
    %cst_16 = arith.constant 0xFF800000 : f32
    %36 = vector.broadcast %cst_16 : f32 to vector<8x32xf32>
    %c0_17 = arith.constant 0 : index
    %c0_18 = arith.constant 0 : index
    %37 = vector.load %arg9[%c0_17, %c0_18] : memref<8x32xf32, #tpu.memory_space<vmem>>, vector<8x32xf32>
    tpu.vector_store %arg9[%c0_17, %c0_18], %36 {strides = array<i32>} : memref<8x32xf32, #tpu.memory_space<vmem>>, vector<8x32xf32>,
    %38 = arith.subi %35, %33 : i32
    %c1_i32 = arith.constant 1 : i32
    %39 = arith.addi %38, %c1_i32 : i32
    %c0_i32_19 = arith.constant 0 : i32
    %c0_i32_20 = arith.constant 0 : i32
    %40 = arith.subi %39, %c0_i32_20 : i32
    %41 = arith.addi %c0_i32_20, %40 : i32
    %c1_i32_21 = arith.constant 1 : i32
    scf.for %arg10 = %c0_i32_20 to %41 step %c1_i32_21  : i32 {
      %46 = arith.addi %33, %arg10 : i32
      %47 = vector.broadcast %46 : i32 to vector<128x1xi32>
      %48 = arith.cmpi eq, %31, %47 : vector<128x1xi32>
      %cst_28 = arith.constant 0xFF800000 : f32
      %49 = vector.shape_cast %48 : vector<128x1xi1> to vector<128x1xi1>
      %50 = vector.broadcast %49 : vector<128x1xi1> to vector<128x32xi1>
      %51 = vector.broadcast %cst_28 : f32 to vector<128x32xf32>
      %52 = arith.select %50, %13, %51 : vector<128x32xi1>, vector<128x32xf32>
      %cst_29 = arith.constant dense<0xFF800000> : vector<32xf32>
      %53 = vector.multi_reduction <maximumf>, %52, %cst_29 [0] : vector<128x32xf32> to vector<32xf32>
      %54 = vector.shape_cast %53 : vector<32xf32> to vector<1x32xf32>
      %55 = arith.index_cast %46 : i32 to index
      %c0_30 = arith.constant 0 : index
      %56 = vector.load %arg9[%55, %c0_30] : memref<8x32xf32, #tpu.memory_space<vmem>>, vector<1x32xf32>
      tpu.vector_store %arg9[%55, %c0_30], %54 {strides = array<i32>} : memref<8x32xf32, #tpu.memory_space<vmem>>, vector<1x32xf32>,
    }
    %c0_22 = arith.constant 0 : index
    %c0_23 = arith.constant 0 : index
    %42 = vector.load %arg7[%c0_22, %c0_23] : memref<8x32xf32, #tpu.memory_space<vmem>>, vector<8x32xf32>
    %c0_24 = arith.constant 0 : index
    %c0_25 = arith.constant 0 : index
    %43 = vector.load %arg9[%c0_24, %c0_25] : memref<8x32xf32, #tpu.memory_space<vmem>>, vector<8x32xf32>
    %44 = arith.maximumf %42, %43 : vector<8x32xf32>
    %c0_26 = arith.constant 0 : index
    %c0_27 = arith.constant 0 : index
    %45 = vector.load %arg7[%c0_26, %c0_27] : memref<8x32xf32, #tpu.memory_space<vmem>>, vector<8x32xf32>
    tpu.vector_store %arg7[%c0_26, %c0_27], %44 {strides = array<i32>} : memref<8x32xf32, #tpu.memory_space<vmem>>, vector<8x32xf32>,
    return
  }
  func.func @transform_0(%arg0: i32, %arg1: memref<2xi32, #tpu.memory_space<smem>>, %arg2: memref<2xi32, #tpu.memory_space<smem>>) -> (i32, i32) {
    %c0_i32 = arith.constant 0 : i32
    %c0_i32_0 = arith.constant 0 : i32
    return %c0_i32, %arg0 : i32, i32
  }
  func.func @transform_1(%arg0: i32, %arg1: memref<2xi32, #tpu.memory_space<smem>>, %arg2: memref<2xi32, #tpu.memory_space<smem>>) -> (i32, i32) {
    %c0_i32 = arith.constant 0 : i32
    %c0_i32_0 = arith.constant 0 : i32
    return %arg0, %c0_i32 : i32, i32
  }
  func.func @transform_2(%arg0: i32, %arg1: memref<2xi32, #tpu.memory_space<smem>>, %arg2: memref<2xi32, #tpu.memory_space<smem>>) -> (i32, i32) {
    %c0_i32 = arith.constant 0 : i32
    %c0_i32_0 = arith.constant 0 : i32
    return %arg0, %c0_i32 : i32, i32
  }
  func.func @transform_3(%arg0: i32, %arg1: memref<2xi32, #tpu.memory_space<smem>>, %arg2: memref<2xi32, #tpu.memory_space<smem>>) -> (i32, i32) {
    %c0_i32 = arith.constant 0 : i32
    %c0_i32_0 = arith.constant 0 : i32
    %c0_i32_1 = arith.constant 0 : i32
    return %c0_i32, %c0_i32_0 : i32, i32
  }
  func.func @transform_4(%arg0: i32, %arg1: memref<2xi32, #tpu.memory_space<smem>>, %arg2: memref<2xi32, #tpu.memory_space<smem>>) -> (i32, i32) {
    %c0_i32 = arith.constant 0 : i32
    %c0_i32_0 = arith.constant 0 : i32
    %c0_i32_1 = arith.constant 0 : i32
    return %c0_i32, %c0_i32_0 : i32, i32
  }
  func.func @transform_5(%arg0: i32, %arg1: memref<2xi32, #tpu.memory_space<smem>>, %arg2: memref<2xi32, #tpu.memory_space<smem>>) -> (i32, i32) {
    %c0_i32 = arith.constant 0 : i32
    %c0_i32_0 = arith.constant 0 : i32
    %c0_i32_1 = arith.constant 0 : i32
    return %c0_i32, %c0_i32_0 : i32, i32
  }
}

</mosaic_0001>

<bundles_post_ra>
// kernel: tpu_custom_call.1
= control target key start
LH: loop header
LB: loop body
LE: loop exit
PB: predicated region body
PF: predicated region fallthrough
CT: control target
= control target key end

     0   :  { %s1458_s0 = inlined_call_operand.vmem [shape: s32[2], index: 0, kind: input, shape index: {}]   ;;  %s1459_s2 = inlined_call_operand.vmem [shape: s32[1,256], index: 2, kind: input, shape index: {}]   ;;  %s1460_s3 = inlined_call_operand.vmem [shape: s32[256,1], index: 3, kind: input, shape index: {}]   ;;  %s1461_s4 = inlined_call_operand.vmem [shape: f32[200,32], index: 4, kind: input, shape index: {}]   ;;  %s1462_s5 = inlined_call_operand.hbm [shape: f32[8,32], index: 5, kind: output, shape index: {0}]   ;;  %s1463_s6 = inlined_call_operand.hbm [shape: f32[8,32], index: 6, kind: output, shape index: {1}]   ;;  %s1464_s7 = inlined_call_operand.vmem [shape: f32[8,1], index: 7, kind: output, shape index: {2}]   ;;  %s1465_s1 = inlined_call_operand.vmem [shape: s32[2], index: 1, kind: input, shape index: {}]  }
   0x1   :  { %s13_s26 = sshll.u32 %s1458_s0, 4  ;;  %s17_s29 = sshll.u32 %s1465_s1, 4  ;;  %s14_s26 = int_to_ptr.vmem [resolvable:$true] %s13_s26  ;;  %s18_s29 = int_to_ptr.vmem [resolvable:$true] %s17_s29 }
   0x2   :  { %s938_s30 = scalar_lea.vmem %s14_s26, 16  ;;  %p943_p1 = scmp.lt.s32.totalorder %s14_s26, %s14_s26 }
   0x3   :  { %p939_p0 = scmp.ne.s32.totalorder %s14_s26, %s938_s30  ;;  %p944_p2 = scmp.lt.s32.totalorder %s938_s30, %s938_s30 }
   0x5   :  { %p945_p3 = por %p944_p2, %p943_p1 }
   0x7   :  { %p946_p4 = pnand %p945_p3, %p939_p0 }
   0x9   :  { %949 = shalt.err (!%p946_p4)  }
   0xa   :  { %s1040_s8 = smov [#allocation4]   ;;  %s950_s9 = scalar_lea.vmem %s18_s29, 16 }
   0xb   :  { %16 = dma.vmem_to_smem %s14_s26, 16, %s1040_s8, [#allocation3] }
   0xc   :  { %p951_p5 = scmp.ne.s32.totalorder %s18_s29, %s950_s9  ;;  %p955_p6 = scmp.lt.s32.totalorder %s18_s29, %s18_s29 }
   0xd   :  { %p956_p7 = scmp.lt.s32.totalorder %s950_s9, %s950_s9 }
   0xf   :  { %p957_p8 = por %p956_p7, %p955_p6 }
  0x11   :  { %p958_p9 = pnand %p957_p8, %p951_p5 }
  0x13   :  { %961 = shalt.err (!%p958_p9)  }
  0x14   :  { %s1041_s0 = smov [#allocation5]  }
  0x15   :  { %20 = dma.vmem_to_smem %s18_s29, 16, %s1041_s0, [#allocation3] }
  0x16   :  { %1022 = dma.done.wait [#allocation3], 32 }
  0x17   :  { %1023 = vsyncadd [#allocation3], 4294967264 }
  0x18   :  { %22 = sfence }
  0x19   :  { %23 = vsyncpa [#allocation7], 0 }
  0x1a   :  { %24 = vsyncpa [#allocation9], 0  ;;  %s1098_s1 = smov 0  }
  0x1b LB: > { %s1104_s10 = sadd.s32 4294967295, %s1034_s1   ;;  %p779_p10 = scmp.ge.s32.totalorder %s1034_s1, 1  ;;  %s1034_s1 = sphi %s1098_s1, %s30_s1  }
  0x1c   : > { %p219_p11 = scmp.lt.s32.totalorder %s1034_s1, 3 }
  0x1e   : > { %p220_p12 = pnand %p779_p10, %p219_p11 }
  0x1f   : > { %p254_p13 = scmp.lt.s32.totalorder (!%p220_p12), %s1104_s10, 1  ;;  %s780_s11 = sshll.u32 (!%p220_p12), %s1104_s10, 4 }
  0x20   : > { %223 = sbr.rel (%p220_p12) target bundleno = 537 (0x219), region = 32  ;;  %p258_p0 = scmp.lt.s32.totalorder (!%p220_p12), %s780_s11, 31 }
  0x21   : > { %p268_p1 = scmp.lt.s32.totalorder (!%p220_p12), %s780_s11, 24  ;;  %p784_p2 = scmp.ne.s32.totalorder (!%p220_p12), %s1104_s10, 0 }
  0x27   : > { %s1111_s12 = scalar_select %p254_p13, %s1104_s10, 1 }
  0x28   : > { %s259_s13 = scalar_select %p258_p0, %s780_s11, 31 }
  0x29   : > { %s256_s16 = scalar_lea.vmem %s1459_s2, %s1111_s12  ;;  %s1469_s11 = smov (!%p268_p1, %s780_s11), 24  ;;  %vm281_vm0 = vcmask (!%p784_p2), 261120   ;;  %vm284_vm1 = vcmask (!%p784_p2), 7168   ;;  %v1042_v0 = vmov (!%p784_p2), 0.0   ;;  %v1043_v1 = vmov (!%p784_p2), -inf  }
  0x2a   : > { %s781_s17 = sshll.u32 %s259_s13, 3  ;;  %s783_s21 = sshll.u32 %s1469_s11, 3  ;;  %282 = vst.msk [vmem:[#allocation6] sm:$0xff] (!%p784_p2), %vm281_vm0, %v1042_v0  ;;  %283 = vst.msk [vmem:[#allocation8] sm:$0xff] (!%p784_p2), %vm281_vm0, %v1043_v1 }
  0x2b   : > { %s1120_s20 = scalar_lea.vmem %s1460_s3, %s781_s17  ;;  %s1125_s24 = scalar_lea.vmem %s1461_s4, %s783_s21  ;;  %285 = vst.msk [vmem:[%s1464_s7] sm:$0xff] (!%p784_p2), %vm284_vm1, %v1042_v0 }
  0x2c   : > { %280 = sbr.rel (%p784_p2) target bundleno = 51 (0x33), region = 36 }
  0x33 PF: > { %v286_v2 = vld [vmem:[%s1125_s24] sm:$0xff]  ;;  %v287_v3 = vld [vmem:[%s1125_s24 + $0x8] sm:$0xff]  ;;  %v302_v4 = vlaneseq  ;;  %s785_s27 = sshll.u32 %s1104_s10, 7  ;;  %v288_v5 = vld [vmem:[%s1125_s24 + $0x10] sm:$0xff]  ;;  %v1044_v6 = vmov 0.0|0.0   ;;  %vm1045_vm2 = vmmov 0  }
  0x34   : > { %864 = vmatprep.subr.bf16.mxu0 %v1044_v6  ;;  %v1136_v7 = vstv %s785_s27  ;;  %v289_v8 = vld [vmem:[%s1125_s24 + $0x18] sm:$0xff]  ;;  %v1046_v10 = vmov 0.0   ;;  %v865_v11 = vpack.c.bf16 %v287_v3, %v286_v2  ;;  %v290_v32 = vld [vmem:[%s1125_s24 + $0x20] sm:$0xff]  ;;  %v291_v33 = vld [vmem:[%s1125_s24 + $0x28] sm:$0xff]  ;;  %s1276_s30 = sld [smem:[#allocation4 + %s1104_s10]] }
  0x35   : > { %v1139_v9 = vshrl.u32 %v302_v4, 7  ;;  %861 = vmatprep.mubr.msk.f32.mxu0 %vm1045_vm2, %v1046_v10  ;;  %v869_v12 = vpack.c.bf16 %v289_v8, %v288_v5  ;;  %v292_v35 = vld [vmem:[%s1125_s24 + $0x30] sm:$0xff]  ;;  %v293_v36 = vld [vmem:[%s1125_s24 + $0x38] sm:$0xff]  ;;  %v873_v44 = vpack.c.bf16 %v291_v33, %v290_v32  ;;  %v294_v49 = vld [vmem:[%s1125_s24 + $0x40] sm:$0xff]  ;;  %s506_s8 = sld [smem:[#allocation5 + %s1104_s10]] }
  0x36   : > { %v877_v48 = vpack.c.bf16 %v293_v36, %v292_v35  ;;  %v295_v50 = vld [vmem:[%s1125_s24 + $0x48] sm:$0xff]  ;;  %v296_v55 = vld [vmem:[%s1125_s24 + $0x50] sm:$0xff]  ;;  %v297_v56 = vld [vmem:[%s1125_s24 + $0x58] sm:$0xff] }
  0x37   : > { %v304_v13 = vadd.s32 8, %v1139_v9  ;;  %v321_v14 = vadd.s32 %v1136_v7, %v1139_v9  ;;  %v305_v15 = vadd.s32 16, %v1139_v9  ;;  %v306_v16 = vadd.s32 24, %v1139_v9  ;;  %v786_v61 = vld [vmem:[%s256_s16] ss:$0 sm:$0xff] }
  0x38   : > { %v307_v17 = vadd.s32 32, %v1139_v9  ;;  %v308_v18 = vadd.s32 40, %v1139_v9  ;;  %v309_v19 = vadd.s32 48, %v1139_v9  ;;  %v310_v20 = vadd.s32 56, %v1139_v9  ;;  %v298_v1 = vld [vmem:[%s1125_s24 + $0x60] sm:$0xff] }
  0x39   : > { %v322_v21 = vadd.s32 %v1136_v7, %v304_v13  ;;  %vm337_vm3 = vcmp.lt.s32.totalorder %v321_v14, 200  ;;  %v323_v22 = vadd.s32 %v1136_v7, %v305_v15  ;;  %v324_v23 = vadd.s32 %v1136_v7, %v306_v16  ;;  %v301_v16 = vld [vmem:[%s1125_s24 + $0x78] sm:$0xff] }
  0x3a   : > { %v1154_v24 = vsel %vm337_vm3, %v286_v2, 0.0  ;;  %v325_v25 = vadd.s32 %v1136_v7, %v307_v17  ;;  %v326_v26 = vadd.s32 %v1136_v7, %v308_v18  ;;  %v1159_v27 = vadd.s32 %v1136_v7, %v309_v19  ;;  %v299_v2 = vld [vmem:[%s1125_s24 + $0x68] sm:$0xff] }
  0x3b   : > { %vm338_vm4 = vcmp.lt.s32.totalorder %v322_v21, 200  ;;  %vm339_vm5 = vcmp.lt.s32.totalorder %v323_v22, 200  ;;  %vm340_vm6 = vcmp.lt.s32.totalorder %v324_v23, 200  ;;  %v328_v28 = vadd.s32 %v1136_v7, %v310_v20  ;;  %s508_s9 = ssub.s32 %s506_s8, %s1276_s30  ;;  %v1282_v20 = vld [vmem:[%s1120_s20] sm:$0xff]  ;;  %v1288_v21 = vld [vmem:[%s1120_s20 + $0x10] sm:$0xff]  ;;  %v1293_v22 = vld [vmem:[%s1120_s20 + $0x18] sm:$0xff] }
  0x3c   : > { %v1162_v29 = vsel %vm338_vm4, %v287_v3, 0.0  ;;  %vm866_vm7 = vmpackc.low %vm338_vm4, %vm337_vm3  ;;  %v1165_v30 = vsel %vm339_vm5, %v288_v5, 0.0  ;;  %v1168_v31 = vsel %vm340_vm6, %v289_v8, 0.0  ;;  %vm341_vm8 = vcmp.lt.s32.totalorder %v325_v25, 200  ;;  %s1290_s0 = sadd.s32 1, %s508_s9  ;;  %v1296_v23 = vld [vmem:[%s1120_s20 + $0x20] sm:$0xff] }
  0x3d   : > { %867 = vmatpush3.bf16.msk.msra.mxu0 %vm866_vm7, %v865_v11  ;;  %vm342_vm9 = vcmp.lt.s32.totalorder %v326_v26, 200  ;;  %v1173_v34 = vsel %vm341_vm8, %v290_v32, 0.0  ;;  %vm343_vm10 = vcmp.lt.s32.totalorder %v1159_v27, 200  ;;  %vm344_vm11 = vcmp.lt.s32.totalorder %v328_v28, 200  ;;  %vm870_vm12 = vmpackc.low %vm340_vm6, %vm339_vm5  ;;  %v300_v11 = vld [vmem:[%s1125_s24 + $0x70] sm:$0xff]  ;;  %v1299_v25 = vld [vmem:[%s1120_s20 + $0x28] sm:$0xff] }
  0x3e   : > { %868 = vmatprep.subr.bf16.mxu0 %v1044_v6  ;;  %v1182_v37 = vsel %vm342_vm9, %v291_v33, 0.0  ;;  %v1186_v38 = vsel %vm343_vm10, %v292_v35, 0.0  ;;  %v1189_v39 = vsel %vm344_vm11, %v293_v36, 0.0  ;;  %v311_v40 = vadd.s32 64, %v1139_v9  ;;  %vm1206_vm13 = vmpackc.low %vm342_vm9, %vm341_vm8  ;;  %v1302_v26 = vld [vmem:[%s1120_s20 + $0x30] sm:$0xff]  ;;  %v1305_v27 = vld [vmem:[%s1120_s20 + $0x38] sm:$0xff] }
  0x3f   : > { %v312_v41 = vadd.s32 72, %v1139_v9  ;;  %v313_v42 = vadd.s32 80, %v1139_v9  ;;  %v314_v43 = vadd.s32 88, %v1139_v9  ;;  %v315_v46 = vadd.s32 96, %v1139_v9  ;;  %vm878_vm4 = vmpackc.low %vm344_vm11, %vm343_vm10  ;;  %v1308_v28 = vld [vmem:[%s1120_s20 + $0x40] sm:$0xff]  ;;  %v1311_v32 = vld [vmem:[%s1120_s20 + $0x48] sm:$0xff] }
  0x40   : > { %v329_v45 = vadd.s32 %v1136_v7, %v311_v40  ;;  %v316_v47 = vadd.s32 104, %v1139_v9  ;;  %v317_v59 = vadd.s32 112, %v1139_v9  ;;  %v318_v4 = vadd.s32 120, %v1139_v9  ;;  %v1314_v33 = vld [vmem:[%s1120_s20 + $0x50] sm:$0xff]  ;;  %v1317_v35 = vld [vmem:[%s1120_s20 + $0x58] sm:$0xff]  ;;  %v1320_v36 = vld [vmem:[%s1120_s20 + $0x60] sm:$0xff] }
  0x41   : > { %871 = vmatpush3.bf16.msk.msra.mxu0 %vm870_vm12, %v869_v12  ;;  %v330_v51 = vadd.s32 %v1136_v7, %v312_v41  ;;  %v331_v52 = vadd.s32 %v1136_v7, %v313_v42  ;;  %v332_v53 = vadd.s32 %v1136_v7, %v314_v43  ;;  %v333_v57 = vadd.s32 %v1136_v7, %v315_v46  ;;  %v1323_v40 = vld [vmem:[%s1120_s20 + $0x68] sm:$0xff]  ;;  %v1326_v41 = vld [vmem:[%s1120_s20 + $0x70] sm:$0xff]  ;;  %v1329_v42 = vld [vmem:[%s1120_s20 + $0x78] sm:$0xff]  ;;  %p805_p3 = scmp.le.s32.totalorder %s1290_s0, 0 }
  0x42   : > { %872 = vmatprep.subr.bf16.mxu0 %v1044_v6  ;;  %vm345_vm14 = vcmp.lt.s32.totalorder %v329_v45, 200  ;;  %v334_v58 = vadd.s32 %v1136_v7, %v316_v47  ;;  %v335_v5 = vadd.s32 %v1136_v7, %v317_v59  ;;  %vm406_vm5 = vcmp.eq.s32.totalorder %v1139_v9, %v786_v61  ;;  %v1285_v9 = vld [vmem:[%s1120_s20 + $0x8] sm:$0xff]  ;;  %v483_v43 = vld [vmem:[%s1464_s7] sm:$0xff]  ;;  %s1339_s15 = smov (!%p805_p3), 0  }
  0x43   : > { %vm346_vm15 = vcmp.lt.s32.totalorder %v330_v51, 200  ;;  %v1216_v60 = vsel %vm345_vm14, %v294_v49, 0.0  ;;  %vm347_vm0 = vcmp.lt.s32.totalorder %v331_v52, 200  ;;  %vm348_vm1 = vcmp.lt.s32.totalorder %v332_v53, 200  ;;  %v409_v46 = vld [vmem:[#allocation6] sm:$0xff] }
  0x44   : > { %v1224_v62 = vsel %vm346_vm15, %v295_v50, 0.0  ;;  %v1227_v63 = vsel %vm347_vm0, %v296_v55, 0.0  ;;  %v1230_v0 = vsel %vm348_vm1, %v297_v56, 0.0  ;;  %vm349_vm2 = vcmp.lt.s32.totalorder %v333_v57, 200  ;;  %vm882_vm8 = vmpackc.low %vm346_vm15, %vm345_vm14 }
  0x45   : > { %875 = vmatpush3.bf16.msk.msra.mxu0 %vm1206_vm13, %v873_v44  ;;  %vm350_vm3 = vcmp.lt.s32.totalorder %v334_v58, 200  ;;  %v1237_v3 = vsel %vm349_vm2, %v298_v1, 0.0  ;;  %v336_v12 = vadd.s32 %v1136_v7, %v318_v4  ;;  %vm351_vm6 = vcmp.lt.s32.totalorder %v335_v5, 200  ;;  %vm886_vm9 = vmpackc.low %vm348_vm1, %vm347_vm0 }
  0x46   : > { %876 = vmatprep.subr.bf16.mxu0 %v1044_v6  ;;  %v1246_v8 = vsel %vm350_vm3, %v299_v2, 0.0  ;;  %v787_v13 = vsel %vm406_vm5, 1.0, %v1046_v10  ;;  %v1255_v14 = vsel %vm351_vm6, %v300_v11, 0.0  ;;  %v881_v15 = vpack.c.bf16 %v295_v50, %v294_v49  ;;  %vm890_vm10 = vmpackc.low %vm350_vm3, %vm349_vm2 }
  0x47   : > { %484 = vadd.xlane.f32.xlu0 %v787_v13  ;;  %vm352_vm7 = vcmp.lt.s32.totalorder %v336_v12, 200  ;;  %v885_v10 = vpack.c.bf16 %v297_v56, %v296_v55  ;;  %v889_v17 = vpack.c.bf16 %v299_v2, %v298_v1  ;;  %v893_v18 = vpack.c.bf16 %v301_v16, %v300_v11 }
  0x48   : > { %v1262_v7 = vsel %vm352_vm7, %v301_v16, 0.0  ;;  %vm894_vm11 = vmpackc.low %vm352_vm7, %vm351_vm6  ;;  %v1047_v19 = vmov 1.0   ;;  %vm481_vm12 = vcmask 261120   ;;  %vm487_vm13 = vcmask 7168  }
  0x49   : > { %879 = vmatpush3.bf16.msk.msra.mxu0 %vm878_vm4, %v877_v48 }
  0x4a   : > { %880 = vmatprep.subr.bf16.mxu0 %v1044_v6 }
  0x4d   : > { %883 = vmatpush3.bf16.msk.msra.mxu0 %vm882_vm8, %v881_v15 }
  0x4e   : > { %884 = vmatprep.subr.bf16.mxu0 %v1044_v6 }
  0x51   : > { %887 = vmatpush3.bf16.msk.msra.mxu0 %vm886_vm9, %v885_v10 }
  0x52   : > { %888 = vmatprep.subr.bf16.mxu0 %v1044_v6 }
  0x55   : > { %891 = vmatpush3.bf16.msk.msra.mxu0 %vm890_vm10, %v889_v17 }
  0x56   : > { %892 = vmatprep.subr.bf16.mxu0 %v1044_v6  ;;  %v1048_v6 = vmov -inf  }
  0x57   : > { %507 = vst.msk [vmem:[#allocation2] sm:$0xff] %vm481_vm12, %v1048_v6 }
  0x59   : > { %895 = vmatpush3.bf16.msk.msra.mxu0 %vm894_vm11, %v893_v18 }
  0x5c   : > { %862 = vmatmul.mubr.msk.f32.vlgmr.msra.gmra.mrb[0].mxu0 %vm406_vm5, %v1047_v19 }
  0xd4   : > { %v485_v44 = vpop.xlane.xlu0 %484 }
  0xd5   : > { %v486_v45 = vadd.f32 %v485_v44, %v483_v43 }
  0xd7   : > { %488 = vst.msk [vmem:[%s1464_s7] sm:$0xff] %vm487_vm13, %v486_v45 }
 0x12c   : > { %738 = sbr.rel (%p805_p3) target bundleno = 489 (0x1e9), region = 87 }
 0x12f   : > { %v476_v47 = vpop.f32.mrb[0].mxu0 }
 0x130   : > { %v480_v48 = vadd.f32 %v476_v47, %v409_v46  ;;  %v863_v49 = vpop.f32.mrb[1].mxu0 }
 0x132   : > { %482 = vst.msk [vmem:[#allocation6] sm:$0xff] %vm481_vm12, %v480_v48 }
 0x133 LB: >> { %v1049_v50 = vmov 0   ;;  %s1346_s16 = sadd.s32 %s1038_s15, %s1276_s30  ;;  %s513_s15 = sadd.s32 1, %s1038_s15   ;;  %s1038_s15 = sphi %s1339_s15, %s513_s15  }
 0x134   : >> { %937 = vset.pattern.permute.xlu1 %v1049_v50  ;;  %936 = vset.pattern.permute.xlu0 %v1049_v50  ;;  %v517_v51 = vstv %s1346_s16  ;;  %s667_s17 = scalar_lea.vmem [#allocation2], %s1346_s16  ;;  %p512_p4 = scmp.ge.s32.totalorder %s513_s15, %s1290_s0 }
 0x135   : >> { %vm520_vm14 = vcmp.eq.s32.totalorder %v1288_v21, %v517_v51  ;;  %vm518_vm15 = vcmp.eq.s32.totalorder %v1282_v20, %v517_v51  ;;  %vm521_vm0 = vcmp.eq.s32.totalorder %v1293_v22, %v517_v51  ;;  %vm519_vm1 = vcmp.eq.s32.totalorder %v1285_v9, %v517_v51 }
 0x136   : >> { %v536_v52 = vsel %vm520_vm14, 1, %v1049_v50  ;;  %v534_v53 = vsel %vm518_vm15, 1, %v1049_v50  ;;  %v537_v54 = vsel %vm521_vm0, 1, %v1049_v50  ;;  %v535_v55 = vsel %vm519_vm1, 1, %v1049_v50 }
 0x137   : >> { %557 = vperm.xlu1 %937, %v536_v52   ;;  %551 = vperm.xlu0 %936, %v534_v53   ;;  %vm523_vm2 = vcmp.eq.s32.totalorder %v1299_v25, %v517_v51  ;;  %vm522_vm3 = vcmp.eq.s32.totalorder %v1296_v23, %v517_v51  ;;  %vm525_vm4 = vcmp.eq.s32.totalorder %v1305_v27, %v517_v51 }
 0x138   : >> { %v539_v56 = vsel %vm523_vm2, 1, %v1049_v50  ;;  %v538_v57 = vsel %vm522_vm3, 1, %v1049_v50  ;;  %vm524_vm5 = vcmp.eq.s32.totalorder %v1302_v26, %v517_v51  ;;  %v541_v58 = vsel %vm525_vm4, 1, %v1049_v50 }
 0x139   : >> { %v540_v59 = vsel %vm524_vm5, 1, %v1049_v50  ;;  %vm527_vm6 = vcmp.eq.s32.totalorder %v1311_v32, %v517_v51  ;;  %vm526_vm7 = vcmp.eq.s32.totalorder %v1308_v28, %v517_v51  ;;  %vm529_vm8 = vcmp.eq.s32.totalorder %v1317_v35, %v517_v51 }
 0x13a   : >> { %v543_v61 = vsel %vm527_vm6, 1, %v1049_v50  ;;  %v542_v1 = vsel %vm526_vm7, 1, %v1049_v50  ;;  %vm528_vm9 = vcmp.eq.s32.totalorder %v1314_v33, %v517_v51  ;;  %v545_v2 = vsel %vm529_vm8, 1, %v1049_v50 }
 0x13b   : >> { %560 = vperm.xlu1 %937, %v537_v54   ;;  %554 = vperm.xlu0 %936, %v535_v55   ;;  %v544_v4 = vsel %vm528_vm9, 1, %v1049_v50  ;;  %vm531_vm10 = vcmp.eq.s32.totalorder %v1323_v40, %v517_v51  ;;  %vm530_vm11 = vcmp.eq.s32.totalorder %v1320_v36, %v517_v51  ;;  %vm533_vm13 = vcmp.eq.s32.totalorder %v1329_v42, %v517_v51 }
 0x13c   : >> { %v547_v5 = vsel %vm531_vm10, 1, %v1049_v50  ;;  %v546_v11 = vsel %vm530_vm11, 1, %v1049_v50  ;;  %vm532_vm14 = vcmp.eq.s32.totalorder %v1326_v41, %v517_v51  ;;  %v549_v12 = vsel %vm533_vm13, 1, %v1049_v50 }
 0x13d   : >> { %v548_v13 = vsel %vm532_vm14, 1, %v1049_v50 }
 0x13f   : >> { %566 = vperm.xlu1 %937, %v539_v56   ;;  %563 = vperm.xlu0 %936, %v538_v57  }
 0x143   : >> { %572 = vperm.xlu1 %937, %v541_v58   ;;  %569 = vperm.xlu0 %936, %v540_v59  }
 0x147   : >> { %578 = vperm.xlu1 %937, %v543_v61   ;;  %575 = vperm.xlu0 %936, %v542_v1  }
 0x14b   : >> { %584 = vperm.xlu1 %937, %v545_v2   ;;  %581 = vperm.xlu0 %936, %v544_v4  }
 0x14f   : >> { %590 = vperm.xlu1 %937, %v547_v5   ;;  %587 = vperm.xlu0 %936, %v546_v11  }
 0x153   : >> { %596 = vperm.xlu1 %937, %v549_v12   ;;  %593 = vperm.xlu0 %936, %v548_v13  }
 0x1b6   : >> { %v558_v15 = vpop.permute.xlu1 %557  ;;  %v552_v16 = vpop.permute.xlu0 %551 }
 0x1b7   : >> { %vm600_vm1 = vcmp.eq.s32.totalorder %v558_v15, 1  ;;  %vm598_vm2 = vcmp.eq.s32.totalorder %v552_v16, 1 }
 0x1b8   : >> { %v616_v48 = vsel %vm600_vm1, %v1165_v30, -inf  ;;  %v614_v49 = vsel %vm598_vm2, %v1154_v24, -inf }
 0x1b9   : >> { %v632_v58 = vsel %vm481_vm12, %v616_v48, -inf  ;;  %v630_v59 = vsel %vm481_vm12, %v614_v49, -inf }
 0x1ba   : >> { %v561_v10 = vpop.permute.xlu1 %560  ;;  %v555_v17 = vpop.permute.xlu0 %554 }
 0x1bb   : >> { %vm601_vm3 = vcmp.eq.s32.totalorder %v561_v10, 1  ;;  %vm599_vm4 = vcmp.eq.s32.totalorder %v555_v17, 1 }
 0x1bc   : >> { %v617_v50 = vsel %vm601_vm3, %v1168_v31, -inf  ;;  %v615_v51 = vsel %vm599_vm4, %v1162_v29, -inf }
 0x1bd   : >> { %v633_v2 = vsel %vm481_vm12, %v617_v50, -inf  ;;  %v631_v4 = vsel %vm481_vm12, %v615_v51, -inf }
 0x1be   : >> { %v567_v18 = vpop.permute.xlu1 %566  ;;  %v564_v19 = vpop.permute.xlu0 %563 }
 0x1bf   : >> { %vm603_vm15 = vcmp.eq.s32.totalorder %v567_v18, 1  ;;  %vm602_vm0 = vcmp.eq.s32.totalorder %v564_v19, 1 }
 0x1c0   : >> { %v619_v46 = vsel %vm603_vm15, %v1182_v37, -inf  ;;  %v618_v47 = vsel %vm602_vm0, %v1173_v34, -inf  ;;  %vm668_vm0 = vcmask 253952  }
 0x1c1   : >> { %v636_v52 = vsel %vm481_vm12, %v619_v46, -inf  ;;  %v634_v53 = vsel %vm481_vm12, %v618_v47, -inf }
 0x1c2   : >> { %v573_v6 = vpop.permute.xlu1 %572  ;;  %v570_v43 = vpop.permute.xlu0 %569  ;;  %v637_v12 = vmax.f32 %v631_v4, %v636_v52  ;;  %v635_v13 = vmax.f32 %v630_v59, %v634_v53 }
 0x1c3   : >> { %vm605_vm5 = vcmp.eq.s32.totalorder %v573_v6, 1  ;;  %vm604_vm6 = vcmp.eq.s32.totalorder %v570_v43, 1 }
 0x1c4   : >> { %v621_v56 = vsel %vm605_vm5, %v1189_v39, -inf  ;;  %v620_v57 = vsel %vm604_vm6, %v1186_v38, -inf }
 0x1c5   : >> { %v640_v15 = vsel %vm481_vm12, %v621_v56, -inf  ;;  %v638_v16 = vsel %vm481_vm12, %v620_v57, -inf }
 0x1c6   : >> { %v579_v44 = vpop.permute.xlu1 %578  ;;  %v576_v45 = vpop.permute.xlu0 %575  ;;  %v641_v46 = vmax.f32 %v633_v2, %v640_v15  ;;  %v639_v47 = vmax.f32 %v632_v58, %v638_v16 }
 0x1c7   : >> { %vm607_vm7 = vcmp.eq.s32.totalorder %v579_v44, 1  ;;  %vm606_vm8 = vcmp.eq.s32.totalorder %v576_v45, 1 }
 0x1c8   : >> { %v623_v61 = vsel %vm607_vm7, %v1224_v62, -inf  ;;  %v622_v1 = vsel %vm606_vm8, %v1216_v60, -inf }
 0x1c9   : >> { %v644_v18 = vsel %vm481_vm12, %v623_v61, -inf  ;;  %v642_v19 = vsel %vm481_vm12, %v622_v1, -inf }
 0x1ca   : >> { %v585_v54 = vpop.permute.xlu1 %584  ;;  %v582_v55 = vpop.permute.xlu0 %581  ;;  %v645_v50 = vmax.f32 %v637_v12, %v644_v18  ;;  %v643_v51 = vmax.f32 %v635_v13, %v642_v19 }
 0x1cb   : >> { %vm609_vm9 = vcmp.eq.s32.totalorder %v585_v54, 1  ;;  %vm608_vm10 = vcmp.eq.s32.totalorder %v582_v55, 1 }
 0x1cc   : >> { %v625_v5 = vsel %vm609_vm9, %v1230_v0, -inf  ;;  %v624_v11 = vsel %vm608_vm10, %v1227_v63, -inf }
 0x1cd   : >> { %v648_v6 = vsel %vm481_vm12, %v625_v5, -inf  ;;  %v646_v43 = vsel %vm481_vm12, %v624_v11, -inf }
 0x1ce   : >> { %v591_v10 = vpop.permute.xlu1 %590  ;;  %v588_v17 = vpop.permute.xlu0 %587  ;;  %v649_v54 = vmax.f32 %v641_v46, %v648_v6  ;;  %v647_v55 = vmax.f32 %v639_v47, %v646_v43 }
 0x1cf   : >> { %vm611_vm11 = vcmp.eq.s32.totalorder %v591_v10, 1  ;;  %vm610_vm13 = vcmp.eq.s32.totalorder %v588_v17, 1 }
 0x1d0   : >> { %v627_v44 = vsel %vm611_vm11, %v1246_v8, -inf  ;;  %v626_v45 = vsel %vm610_vm13, %v1237_v3, -inf }
 0x1d1   : >> { %v652_v48 = vsel %vm481_vm12, %v627_v44, -inf  ;;  %v650_v49 = vsel %vm481_vm12, %v626_v45, -inf }
 0x1d2   : >> { %v597_v52 = vpop.permute.xlu1 %596  ;;  %v594_v53 = vpop.permute.xlu0 %593  ;;  %v653_v56 = vmax.f32 %v645_v50, %v652_v48  ;;  %v651_v57 = vmax.f32 %v643_v51, %v650_v49 }
 0x1d3   : >> { %vm613_vm14 = vcmp.eq.s32.totalorder %v597_v52, 1  ;;  %vm612_vm15 = vcmp.eq.s32.totalorder %v594_v53, 1 }
 0x1d4   : >> { %v629_v59 = vsel %vm613_vm14, %v1262_v7, -inf  ;;  %v628_v61 = vsel %vm612_vm15, %v1255_v14, -inf  ;;  %v658_v5 = vmax.f32 %v651_v57, %v653_v56 }
 0x1d5   : >> { %v656_v58 = vsel %vm481_vm12, %v629_v59, -inf  ;;  %v654_v1 = vsel %vm481_vm12, %v628_v61, -inf }
 0x1d6   : >> { %v657_v2 = vmax.f32 %v649_v54, %v656_v58  ;;  %v655_v4 = vmax.f32 %v647_v55, %v654_v1 }
 0x1d8   : >> { %v659_v11 = vmax.f32 %v655_v4, %v657_v2 }
 0x1da   : >> { %v660_v12 = vmax.f32 %v658_v5, %v659_v11 }
 0x1dc   : >> { %v661_v13 = vrot.slane %v660_v12, 4 }
 0x1de   : >> { %v662_v15 = vmax.f32 %v660_v12, %v661_v13 }
 0x1e0   : >> { %v663_v16 = vrot.slane %v662_v15, 2 }
 0x1e2   : >> { %v664_v10 = vmax.f32 %v662_v15, %v663_v16  ;;  %515 = sbr.rel (!%p512_p4) target bundleno = 307 (0x133), region = 93 }
 0x1e4   : >> { %v665_v17 = vrot.slane %v664_v10, 1 }
 0x1e6   : >> { %v666_v18 = vmax.f32 %v664_v10, %v665_v17 }
 0x1e8   : >> { %669 = vst.msk [vmem:[%s667_s17] sm:$0x1] %vm668_vm0, %v666_v18 }
 0x1e9 PF: > { %v670_v19 = vld [vmem:[#allocation8] sm:$0xff]  ;;  %p904_p5 = scmp.eq.s32.totalorder %s1104_s10, 1  ;;  %s1050_s18 = smov [#allocation6]  }
 0x1ea   : > { %s681_s19 = sshll.u32 %s1050_s18, 4  ;;  %s1051_s20 = smov [#allocation8]   ;;  %s682_s19 = int_to_ptr.vmem [resolvable:$true] %s681_s19 }
 0x1eb   : > { %s692_s21 = sshll.u32 %s1051_s20, 4  ;;  %s962_s22 = scalar_lea.vmem %s682_s19, 128  ;;  %s1404_s21 = int_to_ptr.vmem [resolvable:$true] %s692_s21 }
 0x1ec   : > { %p963_p6 = scmp.ne.s32.totalorder %s682_s19, %s962_s22  ;;  %p969_p9 = scmp.lt.s32.totalorder %s682_s19, %s682_s19 }
 0x1ed   : > { %p970_p10 = scmp.lt.s32.totalorder %s962_s22, %s962_s22 }
 0x1ee   : > { %p964_p7 = pnand %p963_p6, %p904_p5 }
 0x1ef   : > { %v671_v6 = vld [vmem:[#allocation2] sm:$0xff]  ;;  %p971_p11 = por %p970_p10, %p969_p9 }
 0x1f0   : > { %v672_v43 = vmax.f32 %v670_v19, %v671_v6  ;;  %p965_p8 = pneg %p964_p7 }
 0x1f2   : > { %673 = vst.msk [vmem:[#allocation8] sm:$0xff] %vm481_vm12, %v672_v43  ;;  %p972_p12 = pnand %p971_p11, %p965_p8 }
 0x1f4   : > { %975 = shalt.err (!%p972_p12)
}
 0x1f5   : > { %s976_s25 = scalar_lea.hbm %s1462_s5, 128 }
 0x1f6   : > { %p977_p13 = scmp.ne.s32.totalorder %s1462_s5, %s976_s25  ;;  %p982_p2 = scmp.lt.u32.totalorder %s976_s25, %s1462_s5 }
 0x1f8   : > { %p978_p0 = pnand %p977_p13, %p904_p5 }
 0x1fa   : > { %p979_p1 = pneg %p978_p0 }
 0x1fc   : > { %p984_p3 = pnand %p982_p2, %p979_p1 }
 0x1fe   : > { %987 = shalt.err (!%p984_p3)
}
 0x1ff   : > { %897 = dma.vmem_to_hbm [thread:$0]  (%p904_p5), %s682_s19, 128, %s1462_s5, [#allocation7]  }
 0x200   : > { %s988_s9 = scalar_lea.vmem %s1404_s21, 128  ;;  %p995_p8 = scmp.lt.s32.totalorder %s1404_s21, %s1404_s21 }
 0x201   : > { %p989_p4 = scmp.ne.s32.totalorder %s1404_s21, %s988_s9  ;;  %p996_p9 = scmp.lt.s32.totalorder %s988_s9, %s988_s9 }
 0x203   : > { %p990_p6 = pnand %p989_p4, %p904_p5  ;;  %p997_p10 = por %p996_p9, %p995_p8 }
 0x205   : > { %p991_p7 = pneg %p990_p6 }
 0x207   : > { %p998_p11 = pnand %p997_p10, %p991_p7 }
 0x209   : > { %1001 = shalt.err (!%p998_p11)
}
 0x20a   : > { %s1002_s12 = scalar_lea.hbm %s1463_s6, 128 }
 0x20b   : > { %p1003_p12 = scmp.ne.s32.totalorder %s1463_s6, %s1002_s12  ;;  %p1008_p1 = scmp.lt.u32.totalorder %s1002_s12, %s1463_s6 }
 0x20d   : > { %p1004_p13 = pnand %p1003_p12, %p904_p5 }
 0x20f   : > { %p1005_p0 = pneg %p1004_p13 }
 0x211   : > { %p1010_p2 = pnand %p1008_p1, %p1005_p0 }
 0x213   : > { %1013 = shalt.err (!%p1010_p2)
}
 0x214   : > { %899 = dma.vmem_to_hbm [thread:$0]  (%p904_p5), %s1404_s21, 128, %s1463_s6, [#allocation9]  }
 0x215   : > { %1025 = dma.done.wait (%p904_p5), [#allocation7], 128  }
 0x216   : > { %1027 = vsyncadd (%p904_p5), [#allocation7], 4294967168 }
 0x217   : > { %1029 = dma.done.wait (%p904_p5), [#allocation9], 128  }
 0x218   : > { %1031 = vsyncadd (%p904_p5), [#allocation9], 4294967168 }
 0x219 PF: > { %s30_s1 = sadd.s32 1, %s1034_s1  }
 0x21a   : > { %p27_p3 = scmp.ge.s32.totalorder %s30_s1, 4  }
 0x21c   :  { %29 = sbr.rel (!%p27_p3) target bundleno = 27 (0x1b), region = 104 }
 0x223   :  { %715 = vsyncpa [#allocation7], 1 }
 0x224   :  { %717 = vsyncpa [#allocation7 + $0x1], 1 }
 0x225   :  { %718 = vsyncpa [#allocation9], 1 }

</bundles_post_ra>
